<compile_context>
chip_gen: v6e
topology: v6e:2x2x1
jax: 0.10.0
libtpu: 0.0.40
codegen_flags: <defaults>
</compile_context>

<pallas_src>
import math

import jax
import jax.numpy as jnp
from jax.experimental import pallas as pl
from jax.experimental.pallas import tpu as pltpu


def _sigmoid(x):
    # jax.nn.sigmoid -> lax.logistic; rides the EUP slot and matches the
    # pure-JAX reference numerically.
    return jax.nn.sigmoid(x)


def autoencoder_kernel(x_ref,
                       w1_ref, b1_ref,
                       w2_ref, b2_ref,
                       w3_ref, b3_ref,
                       w4_ref, b4_ref,
                       o_ref):
    x = x_ref[...]

    # ---- encoder ----
    h = jnp.dot(x, w1_ref[...], preferred_element_type=jnp.float32) + b1_ref[...]
    h = jnp.maximum(h, 0.0)                                   # ReLU
    z = jnp.dot(h, w2_ref[...], preferred_element_type=jnp.float32) + b2_ref[...]
    z = jnp.maximum(z, 0.0)                                   # ReLU
    z = _sigmoid(z)                                           # Sigmoid

    # ---- decoder ----
    d = jnp.dot(z, w3_ref[...], preferred_element_type=jnp.float32) + b3_ref[...]
    d = jnp.maximum(d, 0.0)                                   # ReLU
    y = jnp.dot(d, w4_ref[...], preferred_element_type=jnp.float32) + b4_ref[...]
    y = _sigmoid(y)                                           # Sigmoid

    o_ref[...] = y.astype(o_ref.dtype)


def _round_up(n, m):
    return ((n + m - 1) // m) * m


def _vmem_caps():
    """Generation-aware VMEM capacity (bytes).  Conservative 64 MiB fallback
    (v7x per-TC) if the query is unavailable."""
    try:
        cap = int(pltpu.get_tpu_info().vmem_capacity_bytes)
        if cap <= 0:
            cap = 64 * 1024 * 1024
    except Exception:
        cap = 64 * 1024 * 1024
    # Leave headroom for Mosaic internal scratch; never ask for more than 96 MiB.
    limit = max(32 * 1024 * 1024, min(cap - 8 * 1024 * 1024, 96 * 1024 * 1024))
    budget = limit - 8 * 1024 * 1024
    return budget, limit


def _pack_params(params, p, input_size, in_pad):
    """Exact lane-dense packing: zero-pad the feature dim to in_pad, then
    block-diagonal replicate every weight (kron(I_p, W)) and tile every bias
    so the kernel can run on a (rows/p, p*in_pad) view of x."""
    w1, b1 = params["w1"], params["b1"]
    w2, b2 = params["w2"], params["b2"]
    w3, b3 = params["w3"], params["b3"]
    w4, b4 = params["w4"], params["b4"]
    if in_pad != input_size:
        pad = in_pad - input_size
        w1 = jnp.pad(w1, ((0, pad), (0, 0)))    # zero rows: padded x cols contribute 0
        w4 = jnp.pad(w4, ((0, 0), (0, pad)))    # padded output cols (sliced off later)
        b4 = jnp.pad(b4, ((0, 0), (0, pad)))

    def kron(w):
        return jnp.kron(jnp.eye(p, dtype=w.dtype), w)

    def tile_b(b):
        return jnp.tile(b, (1, p))

    return [kron(w1), tile_b(b1), kron(w2), tile_b(b2),
            kron(w3), tile_b(b3), kron(w4), tile_b(b4)]


def autoencoder_forward(x, params, *, target_block_bytes=4 * 1024 * 1024):
    """x: (B, input_size) float32.  params: dict of weights/biases.

    target_block_bytes: desired size of each pipelined x/out block (~2-4 MiB
    keeps the HBM pipeline on the roofline plateau)."""
    B, input_size = x.shape

    # ---- lane-dense packing factor ----
    # Pad the feature dim to a multiple of 16 so p = 128/gcd(in_pad,128) <= 8.
    in_pad = _round_up(input_size, 16)
    p = 128 // math.gcd(in_pad, 128)
    wide_cols = p * in_pad

    # Pad the batch only up to a multiple of p (<= p-1 <= 7 rows; 0 in the
    # common case) so the lane-dense reshape is a free bitcast under jit.
    rows_pad = (-B) % p
    cols_pad = in_pad - input_size
    if rows_pad or cols_pad:
        x = jnp.pad(x, ((0, rows_pad), (0, cols_pad)))
    Bp = B + rows_pad
    R = Bp // p                                   # rows of the wide view

    packed = _pack_params(params, p, input_size, in_pad)

    # ---- tile sizing: by bytes, against a generation-aware VMEM budget ----
    budget, vmem_limit_cap = _vmem_caps()
    # x/out are double-buffered; constant weight blocks also get a 2x
    # allocation even though they are DMA'd only once (constant index_map).
    w_bytes = 2 * sum(int(a.size) * 4 for a in packed)

    def pipeline_bytes(tw):
        return 2 * 2 * tw * wide_cols * 4 + w_bytes

    if R <= 8:
        tile_wide = R                              # full-extent block (allowed)
    else:
        tw = max(8, (target_block_bytes // (wide_cols * 4)) // 8 * 8)
        tw = min(tw, (R // 8) * 8)                 # block never exceeds the array
        # >= 2 grid steps whenever possible -> batch axis shards across the
        # two TensorCores on v7x (no effect on v5e/v6e).
        tw = min(tw, _round_up(pl.cdiv(R, 2), 8))
        while tw > 8 and pipeline_bytes(tw) > budget:
            tw = max(8, (tw // 2) // 8 * 8)
        tile_wide = tw

    grid = (pl.cdiv(R, tile_wide),)                # non-divisible grid is fine:
    #                                               Pallas masks the partial last block.

    x_wide = x.reshape(R, wide_cols)

    # Weights/biases: full block, constant index_map -> DMA'd once, never
    # re-fetched across grid steps.
    def full_spec(arr):
        return pl.BlockSpec(arr.shape, lambda i: (0, 0))

    io_spec = pl.BlockSpec((tile_wide, wide_cols), lambda i: (i, 0))

    weight_bytes = sum(int(a.size) * 4 for a in packed)
    cost = pl.CostEstimate(
        # Actual kernel flops on the kron-packed weights: 2*R*K*N per matmul.
        flops=int(2 * R * sum(int(w.size) for w in (packed[0], packed[2],
                                                    packed[4], packed[6]))),
        transcendentals=int(R * (packed[2].shape[1] + wide_cols)),  # two sigmoids
        bytes_accessed=int(2 * R * wide_cols * 4 + weight_bytes),
    )

    vmem_limit = max(32 * 1024 * 1024,
                     min(vmem_limit_cap, pipeline_bytes(tile_wide) + 8 * 1024 * 1024))

    out_wide = pl.pallas_call(
        autoencoder_kernel,
        out_shape=jax.ShapeDtypeStruct((R, wide_cols), x.dtype),
        grid_spec=pltpu.PrefetchScalarGridSpec(
            num_scalar_prefetch=0,
            grid=grid,
            in_specs=[io_spec] + [full_spec(a) for a in packed],
            out_specs=io_spec,
        ),
        compiler_params=pltpu.CompilerParams(
            dimension_semantics=("parallel",),
            vmem_limit_bytes=int(vmem_limit),
        ),
        cost_estimate=cost,
    )(x_wide, *packed)

    out = out_wide.reshape(Bp, in_pad)
    if rows_pad or cols_pad:
        out = out[:B, :input_size]
    return out


def init_params(key, input_size, encoding_dim):
    """Deterministic init mirroring torch.nn.Linear default U(-1/sqrt(in), 1/sqrt(in))."""
    dims = [
        ("w1", "b1", input_size, 16),
        ("w2", "b2", 16, encoding_dim),
        ("w3", "b3", encoding_dim, 16),
        ("w4", "b4", 16, input_size),
    ]
    params = {}
    keys = jax.random.split(key, 2 * len(dims))
    for idx, (wn, bn, fan_in, fan_out) in enumerate(dims):
        bound = 1.0 / (fan_in ** 0.5)
        params[wn] = jax.random.uniform(
            keys[2 * idx], (fan_in, fan_out), jnp.float32, -bound, bound)
        params[bn] = jax.random.uniform(
            keys[2 * idx + 1], (1, fan_out), jnp.float32, -bound, bound)
    return params


def reference_forward(x, p):
    """Pure-JAX reference of the same forward pass."""
    h = jnp.maximum(x @ p["w1"] + p["b1"], 0.0)
    z = jax.nn.sigmoid(jnp.maximum(h @ p["w2"] + p["b2"], 0.0))
    d = jnp.maximum(z @ p["w3"] + p["b3"], 0.0)
    return jax.nn.sigmoid(d @ p["w4"] + p["b4"])


if __name__ == "__main__":
    key = jax.random.PRNGKey(0)
    k_param, k_x = jax.random.split(key)

    batch = 1000          # p=4 -> wide view (250, 128); non-divisible grid of 2 steps
    input_size = 32
    encoding_dim = 8

    params = init_params(k_param, input_size, encoding_dim)
    x = jax.random.normal(k_x, (batch, input_size), jnp.float32)

    fwd = jax.jit(lambda xx: autoencoder_forward(xx, params))
    y = jax.block_until_ready(fwd(x))

    y_ref = reference_forward(x, params)
    assert y.shape == (batch, input_size)
    # Tolerance covers MXU f32-matmul pass differences vs the XLA reference;
    # any layout/packing bug would produce O(0.1) errors.
    assert bool(jnp.allclose(y, y_ref, atol=1e-3, rtol=1e-3)), "mismatch vs reference"

    print("KERNEL_OK")
</pallas_src>

<mosaic_0001>
module attributes {stable_mosaic.version = 11 : i64} {
  func.func @autoencoder_kernel(%arg0: i32, %arg1: memref<128x128xf32, #tpu.memory_space<vmem>>, %arg2: memref<128x64xf32, #tpu.memory_space<vmem>>, %arg3: memref<1x64xf32, #tpu.memory_space<vmem>>, %arg4: memref<64x32xf32, #tpu.memory_space<vmem>>, %arg5: memref<1x32xf32, #tpu.memory_space<vmem>>, %arg6: memref<32x64xf32, #tpu.memory_space<vmem>>, %arg7: memref<1x64xf32, #tpu.memory_space<vmem>>, %arg8: memref<64x128xf32, #tpu.memory_space<vmem>>, %arg9: memref<1x128xf32, #tpu.memory_space<vmem>>, %arg10: memref<128x128xf32, #tpu.memory_space<vmem>>) attributes {dimension_semantics = [#tpu.dimension_semantics<parallel>], iteration_bounds = array<i64: 2>, scalar_prefetch = 0 : i64, scratch_operands = 0 : i64, tpu.core_type = #tpu.core_type<tc>, window_params = [{transform_indices = @transform_0, window_bounds = array<i64: 128, 128>}, {pipeline_mode = #tpu.pipeline_mode<synchronous>, transform_indices = @transform_1, window_bounds = array<i64: 128, 64>}, {pipeline_mode = #tpu.pipeline_mode<synchronous>, transform_indices = @transform_2, window_bounds = array<i64: 1, 64>}, {pipeline_mode = #tpu.pipeline_mode<synchronous>, transform_indices = @transform_3, window_bounds = array<i64: 64, 32>}, {pipeline_mode = #tpu.pipeline_mode<synchronous>, transform_indices = @transform_4, window_bounds = array<i64: 1, 32>}, {pipeline_mode = #tpu.pipeline_mode<synchronous>, transform_indices = @transform_5, window_bounds = array<i64: 32, 64>}, {pipeline_mode = #tpu.pipeline_mode<synchronous>, transform_indices = @transform_6, window_bounds = array<i64: 1, 64>}, {pipeline_mode = #tpu.pipeline_mode<synchronous>, transform_indices = @transform_7, window_bounds = array<i64: 64, 128>}, {pipeline_mode = #tpu.pipeline_mode<synchronous>, transform_indices = @transform_8, window_bounds = array<i64: 1, 128>}, {transform_indices = @transform_9, window_bounds = array<i64: 128, 128>}]} {
    %c0 = arith.constant 0 : index
    %c0_0 = arith.constant 0 : index
    %0 = vector.load %arg1[%c0, %c0_0] : memref<128x128xf32, #tpu.memory_space<vmem>>, vector<128x128xf32>
    %c0_1 = arith.constant 0 : index
    %c0_2 = arith.constant 0 : index
    %1 = vector.load %arg2[%c0_1, %c0_2] : memref<128x64xf32, #tpu.memory_space<vmem>>, vector<128x64xf32>
    %cst = arith.constant dense<0.000000e+00> : vector<128x64xf32>
    %2 = tpu.matmul %0, %1, %cst {dimension_numbers = #tpu.dot_dimension_numbers<[1], [0], [0], [1], [0, 0, 1, 1], [], []>} : vector<128x128xf32>, vector<128x64xf32>, vector<128x64xf32> -> vector<128x64xf32>
    %c0_3 = arith.constant 0 : index
    %c0_4 = arith.constant 0 : index
    %3 = vector.load %arg3[%c0_3, %c0_4] : memref<1x64xf32, #tpu.memory_space<vmem>>, vector<1x64xf32>
    %4 = vector.broadcast %3 : vector<1x64xf32> to vector<128x64xf32>
    %5 = arith.addf %2, %4 : vector<128x64xf32>
    %cst_5 = arith.constant 0.000000e+00 : f32
    %6 = vector.broadcast %cst_5 : f32 to vector<128x64xf32>
    %7 = arith.maximumf %5, %6 : vector<128x64xf32>
    %c0_6 = arith.constant 0 : index
    %c0_7 = arith.constant 0 : index
    %8 = vector.load %arg4[%c0_6, %c0_7] : memref<64x32xf32, #tpu.memory_space<vmem>>, vector<64x32xf32>
    %cst_8 = arith.constant dense<0.000000e+00> : vector<128x32xf32>
    %9 = tpu.matmul %7, %8, %cst_8 {dimension_numbers = #tpu.dot_dimension_numbers<[1], [0], [0], [1], [0, 0, 1, 1], [], []>} : vector<128x64xf32>, vector<64x32xf32>, vector<128x32xf32> -> vector<128x32xf32>
    %c0_9 = arith.constant 0 : index
    %c0_10 = arith.constant 0 : index
    %10 = vector.load %arg5[%c0_9, %c0_10] : memref<1x32xf32, #tpu.memory_space<vmem>>, vector<1x32xf32>
    %11 = vector.broadcast %10 : vector<1x32xf32> to vector<128x32xf32>
    %12 = arith.addf %9, %11 : vector<128x32xf32>
    %cst_11 = arith.constant 0.000000e+00 : f32
    %13 = vector.broadcast %cst_11 : f32 to vector<128x32xf32>
    %14 = arith.maximumf %12, %13 : vector<128x32xf32>
    %15 = arith.negf %14 : vector<128x32xf32>
    %16 = math.exp %15 : vector<128x32xf32>
    %cst_12 = arith.constant 1.000000e+00 : f32
    %17 = vector.broadcast %cst_12 : f32 to vector<128x32xf32>
    %18 = arith.addf %17, %16 : vector<128x32xf32>
    %19 = arith.divf %17, %18 : vector<128x32xf32>
    %c0_13 = arith.constant 0 : index
    %c0_14 = arith.constant 0 : index
    %20 = vector.load %arg6[%c0_13, %c0_14] : memref<32x64xf32, #tpu.memory_space<vmem>>, vector<32x64xf32>
    %cst_15 = arith.constant dense<0.000000e+00> : vector<128x64xf32>
    %21 = tpu.matmul %19, %20, %cst_15 {dimension_numbers = #tpu.dot_dimension_numbers<[1], [0], [0], [1], [0, 0, 1, 1], [], []>} : vector<128x32xf32>, vector<32x64xf32>, vector<128x64xf32> -> vector<128x64xf32>
    %c0_16 = arith.constant 0 : index
    %c0_17 = arith.constant 0 : index
    %22 = vector.load %arg7[%c0_16, %c0_17] : memref<1x64xf32, #tpu.memory_space<vmem>>, vector<1x64xf32>
    %23 = vector.broadcast %22 : vector<1x64xf32> to vector<128x64xf32>
    %24 = arith.addf %21, %23 : vector<128x64xf32>
    %cst_18 = arith.constant 0.000000e+00 : f32
    %25 = vector.broadcast %cst_18 : f32 to vector<128x64xf32>
    %26 = arith.maximumf %24, %25 : vector<128x64xf32>
    %c0_19 = arith.constant 0 : index
    %c0_20 = arith.constant 0 : index
    %27 = vector.load %arg8[%c0_19, %c0_20] : memref<64x128xf32, #tpu.memory_space<vmem>>, vector<64x128xf32>
    %cst_21 = arith.constant dense<0.000000e+00> : vector<128x128xf32>
    %28 = tpu.matmul %26, %27, %cst_21 {dimension_numbers = #tpu.dot_dimension_numbers<[1], [0], [0], [1], [0, 0, 1, 1], [], []>} : vector<128x64xf32>, vector<64x128xf32>, vector<128x128xf32> -> vector<128x128xf32>
    %c0_22 = arith.constant 0 : index
    %c0_23 = arith.constant 0 : index
    %29 = vector.load %arg9[%c0_22, %c0_23] : memref<1x128xf32, #tpu.memory_space<vmem>>, vector<1x128xf32>
    %30 = vector.broadcast %29 : vector<1x128xf32> to vector<128x128xf32>
    %31 = arith.addf %28, %30 : vector<128x128xf32>
    %32 = arith.negf %31 : vector<128x128xf32>
    %33 = math.exp %32 : vector<128x128xf32>
    %cst_24 = arith.constant 1.000000e+00 : f32
    %34 = vector.broadcast %cst_24 : f32 to vector<128x128xf32>
    %35 = arith.addf %34, %33 : vector<128x128xf32>
    %36 = arith.divf %34, %35 : vector<128x128xf32>
    %c0_25 = arith.constant 0 : index
    %c0_26 = arith.constant 0 : index
    %37 = vector.load %arg10[%c0_25, %c0_26] : memref<128x128xf32, #tpu.memory_space<vmem>>, vector<128x128xf32>
    tpu.vector_store %arg10[%c0_25, %c0_26], %36 {strides = array<i32>} : memref<128x128xf32, #tpu.memory_space<vmem>>, vector<128x128xf32>,
    return
  }
  func.func @transform_0(%arg0: i32) -> (i32, i32) {
    %c0_i32 = arith.constant 0 : i32
    %c0_i32_0 = arith.constant 0 : i32
    return %arg0, %c0_i32 : i32, i32
  }
  func.func @transform_1(%arg0: i32) -> (i32, i32) {
    %c0_i32 = arith.constant 0 : i32
    %c0_i32_0 = arith.constant 0 : i32
    %c0_i32_1 = arith.constant 0 : i32
    return %c0_i32, %c0_i32_0 : i32, i32
  }
  func.func @transform_2(%arg0: i32) -> (i32, i32) {
    %c0_i32 = arith.constant 0 : i32
    %c0_i32_0 = arith.constant 0 : i32
    %c0_i32_1 = arith.constant 0 : i32
    return %c0_i32, %c0_i32_0 : i32, i32
  }
  func.func @transform_3(%arg0: i32) -> (i32, i32) {
    %c0_i32 = arith.constant 0 : i32
    %c0_i32_0 = arith.constant 0 : i32
    %c0_i32_1 = arith.constant 0 : i32
    return %c0_i32, %c0_i32_0 : i32, i32
  }
  func.func @transform_4(%arg0: i32) -> (i32, i32) {
    %c0_i32 = arith.constant 0 : i32
    %c0_i32_0 = arith.constant 0 : i32
    %c0_i32_1 = arith.constant 0 : i32
    return %c0_i32, %c0_i32_0 : i32, i32
  }
  func.func @transform_5(%arg0: i32) -> (i32, i32) {
    %c0_i32 = arith.constant 0 : i32
    %c0_i32_0 = arith.constant 0 : i32
    %c0_i32_1 = arith.constant 0 : i32
    return %c0_i32, %c0_i32_0 : i32, i32
  }
  func.func @transform_6(%arg0: i32) -> (i32, i32) {
    %c0_i32 = arith.constant 0 : i32
    %c0_i32_0 = arith.constant 0 : i32
    %c0_i32_1 = arith.constant 0 : i32
    return %c0_i32, %c0_i32_0 : i32, i32
  }
  func.func @transform_7(%arg0: i32) -> (i32, i32) {
    %c0_i32 = arith.constant 0 : i32
    %c0_i32_0 = arith.constant 0 : i32
    %c0_i32_1 = arith.constant 0 : i32
    return %c0_i32, %c0_i32_0 : i32, i32
  }
  func.func @transform_8(%arg0: i32) -> (i32, i32) {
    %c0_i32 = arith.constant 0 : i32
    %c0_i32_0 = arith.constant 0 : i32
    %c0_i32_1 = arith.constant 0 : i32
    return %c0_i32, %c0_i32_0 : i32, i32
  }
  func.func @transform_9(%arg0: i32) -> (i32, i32) {
    %c0_i32 = arith.constant 0 : i32
    %c0_i32_0 = arith.constant 0 : i32
    return %arg0, %c0_i32 : i32, i32
  }
}

</mosaic_0001>

<bundles_post_ra>
// kernel: _lambda_.1
= control target key start
LH: loop header
LB: loop body
LE: loop exit
PB: predicated region body
PF: predicated region fallthrough
CT: control target
= control target key end

     0   :  { %s2027_s30 = smov 0   ;;  %s2321_s0 = inlined_call_operand.vmem [shape: f32[250,128], index: 0, kind: input, shape index: {}]   ;;  %s2322_s1 = inlined_call_operand.vmem [shape: f32[128,64], index: 1, kind: input, shape index: {}]   ;;  %s2323_s2 = inlined_call_operand.vmem [shape: f32[1,64], index: 2, kind: input, shape index: {}]   ;;  %s2324_s3 = inlined_call_operand.vmem [shape: f32[64,32], index: 3, kind: input, shape index: {}]   ;;  %s2325_s4 = inlined_call_operand.vmem [shape: f32[1,32], index: 4, kind: input, shape index: {}]   ;;  %s2326_s5 = inlined_call_operand.vmem [shape: f32[32,64], index: 5, kind: input, shape index: {}]   ;;  %s2327_s6 = inlined_call_operand.vmem [shape: f32[1,64], index: 6, kind: input, shape index: {}]   ;;  %s2328_s7 = inlined_call_operand.vmem [shape: f32[64,128], index: 7, kind: input, shape index: {}]   ;;  %s2329_s8 = inlined_call_operand.vmem [shape: f32[1,128], index: 8, kind: input, shape index: {}]   ;;  %s2330_s9 = inlined_call_operand.vmem [shape: f32[250,128], index: 9, kind: output, shape index: {}]  }
   0x1 LB: > { %s1454_s10 = sadd.s32 4294967295, %s1975_s30   ;;  %p1458_p0 = scmp.ge.s32.totalorder %s1975_s30, 1  ;;  %s1975_s30 = sphi %s2027_s30, %s19_s30  }
   0x2   : > { %p288_p1 = scmp.lt.s32.totalorder %s1975_s30, 3 }
   0x4   : > { %p289_p2 = pnand %p1458_p0, %p288_p1 }
   0x5   : > { %s1459_s15 = sshll.u32 (!%p289_p2), %s1454_s10, 4 }
   0x6   : > { %292 = sbr.rel (%p289_p2) target bundleno = 935 (0x3a7), region = 56  ;;  %p325_p3 = scmp.lt.s32.totalorder (!%p289_p2), %s1459_s15, 31 }
   0xb   : > { %v367_v0 = vld [vmem:[%s2322_s1 + $0x78] sm:$0xff]  ;;  %v366_v1 = vld [vmem:[%s2322_s1 + $0x70] sm:$0xff]  ;;  %v365_v2 = vld [vmem:[%s2322_s1 + $0x68] sm:$0xff]  ;;  %s2332_s15 = smov (!%p325_p3, %s1459_s15), 31  ;;  %vm551_vm0 = vcmask 523264   ;;  %vm868_vm1 = vcmask 261120  }
   0xc   : > { %1649 = vmatprep.subr.mxu0 %v367_v0  ;;  %v364_v3 = vld [vmem:[%s2322_s1 + $0x60] sm:$0xff]  ;;  %s1460_s20 = sshll.u32 %s2332_s15, 3  ;;  %v543_v4 = vld [vmem:[%s2324_s3 + $0x38] sm:$0xff]  ;;  %v542_v6 = vld [vmem:[%s2324_s3 + $0x30] sm:$0xff] }
   0xd   : > { %1650 = vmatpush3.msra.mxu0 %v367_v0  ;;  %v363_v5 = vld [vmem:[%s2322_s1 + $0x58] sm:$0xff]  ;;  %s2061_s27 = scalar_lea.vmem %s2321_s0, %s1460_s20  ;;  %1705 = vmatprep.subr.mxu1 %v543_v4  ;;  %v362_v8 = vld [vmem:[%s2322_s1 + $0x50] sm:$0xff]  ;;  %v541_v9 = vld [vmem:[%s2324_s3 + $0x28] sm:$0xff] }
   0xe   : > { %1651 = vmatprep.subr.mxu0 %v366_v1  ;;  %v336_v7 = vld [vmem:[%s2061_s27] sm:$0xff]  ;;  %1706 = vmatpush3.msra.mxu1 %v543_v4  ;;  %v361_v10 = vld [vmem:[%s2322_s1 + $0x48] sm:$0xff]  ;;  %v359_v13 = vld [vmem:[%s2322_s1 + $0x38] sm:$0xff] }
   0xf   : > { %1652 = vmatpush3.msra.mxu0 %v366_v1  ;;  %1681 = vmatprep.mubr.f32.mxu0 %v336_v7  ;;  %v540_v11 = vld [vmem:[%s2324_s3 + $0x20] sm:$0xff]  ;;  %v358_v14 = vld [vmem:[%s2322_s1 + $0x30] sm:$0xff]  ;;  %v357_v15 = vld [vmem:[%s2322_s1 + $0x28] sm:$0xff] }
  0x10   : > { %1653 = vmatprep.subr.mxu0 %v365_v2  ;;  %1707 = vmatprep.subr.mxu1 %v542_v6  ;;  %v360_v12 = vld [vmem:[%s2322_s1 + $0x40] sm:$0xff]  ;;  %v355_v17 = vld [vmem:[%s2322_s1 + $0x18] sm:$0xff]  ;;  %v354_v18 = vld [vmem:[%s2322_s1 + $0x10] sm:$0xff] }
  0x11   : > { %1654 = vmatpush3.msra.mxu0 %v365_v2  ;;  %1708 = vmatpush3.msra.mxu1 %v542_v6  ;;  %v356_v16 = vld [vmem:[%s2322_s1 + $0x20] sm:$0xff]  ;;  %v353_v19 = vld [vmem:[%s2322_s1 + $0x8] sm:$0xff]  ;;  %v338_v22 = vld [vmem:[%s2061_s27 + $0x10] sm:$0xff] }
  0x12   : > { %1655 = vmatprep.subr.mxu0 %v364_v3  ;;  %1709 = vmatprep.subr.mxu1 %v541_v9  ;;  %v352_v20 = vld [vmem:[%s2322_s1] sm:$0xff]  ;;  %v337_v21 = vld [vmem:[%s2061_s27 + $0x8] sm:$0xff]  ;;  %v339_v23 = vld [vmem:[%s2061_s27 + $0x18] sm:$0xff] }
  0x13   : > { %1656 = vmatpush3.msra.mxu0 %v364_v3  ;;  %1710 = vmatpush3.msra.mxu1 %v541_v9  ;;  %v340_v24 = vld [vmem:[%s2061_s27 + $0x20] sm:$0xff]  ;;  %v341_v25 = vld [vmem:[%s2061_s27 + $0x28] sm:$0xff]  ;;  %v342_v26 = vld [vmem:[%s2061_s27 + $0x30] sm:$0xff] }
  0x14   : > { %1657 = vmatprep.subr.mxu0 %v363_v5  ;;  %1711 = vmatprep.subr.mxu1 %v540_v11  ;;  %v343_v27 = vld [vmem:[%s2061_s27 + $0x38] sm:$0xff]  ;;  %v344_v28 = vld [vmem:[%s2061_s27 + $0x40] sm:$0xff]  ;;  %v345_v29 = vld [vmem:[%s2061_s27 + $0x48] sm:$0xff] }
  0x15   : > { %1658 = vmatpush3.msra.mxu0 %v363_v5  ;;  %1712 = vmatpush3.msra.mxu1 %v540_v11  ;;  %v346_v30 = vld [vmem:[%s2061_s27 + $0x50] sm:$0xff]  ;;  %v347_v31 = vld [vmem:[%s2061_s27 + $0x58] sm:$0xff]  ;;  %v348_v32 = vld [vmem:[%s2061_s27 + $0x60] sm:$0xff] }
  0x16   : > { %1659 = vmatprep.subr.mxu0 %v362_v8  ;;  %v349_v33 = vld [vmem:[%s2061_s27 + $0x68] sm:$0xff]  ;;  %v350_v34 = vld [vmem:[%s2061_s27 + $0x70] sm:$0xff]  ;;  %v351_v35 = vld [vmem:[%s2061_s27 + $0x78] sm:$0xff]  ;;  %s2299_s27 = scalar_lea.vmem %s2330_s9, %s1460_s20 }
  0x17   : > { %1660 = vmatpush3.msra.mxu0 %v362_v8  ;;  %v539_v36 = vld [vmem:[%s2324_s3 + $0x18] sm:$0xff]  ;;  %v538_v37 = vld [vmem:[%s2324_s3 + $0x10] sm:$0xff]  ;;  %v537_v38 = vld [vmem:[%s2324_s3 + $0x8] sm:$0xff] }
  0x18   : > { %1661 = vmatprep.subr.mxu0 %v361_v10  ;;  %1713 = vmatprep.subr.mxu1 %v539_v36  ;;  %v536_v39 = vld [vmem:[%s2324_s3] sm:$0xff] }
  0x19   : > { %1662 = vmatpush3.msra.mxu0 %v361_v10  ;;  %1714 = vmatpush3.msra.mxu1 %v539_v36  ;;  %v1463_v40 = vld [vmem:[%s2323_s2] ss:$0 sm:$0xff] }
  0x1a   : > { %1663 = vmatprep.subr.mxu0 %v360_v12  ;;  %1715 = vmatprep.subr.mxu1 %v538_v37 }
  0x1b   : > { %1664 = vmatpush3.msra.mxu0 %v360_v12  ;;  %1716 = vmatpush3.msra.mxu1 %v538_v37 }
  0x1c   : > { %1665 = vmatprep.subr.mxu0 %v359_v13  ;;  %1717 = vmatprep.subr.mxu1 %v537_v38 }
  0x1d   : > { %1666 = vmatpush3.msra.mxu0 %v359_v13  ;;  %1718 = vmatpush3.msra.mxu1 %v537_v38 }
  0x1e   : > { %1667 = vmatprep.subr.mxu0 %v358_v14  ;;  %1719 = vmatprep.subr.mxu1 %v536_v39 }
  0x1f   : > { %1668 = vmatpush3.msra.mxu0 %v358_v14  ;;  %1720 = vmatpush3.msra.mxu1 %v536_v39 }
  0x20   : > { %1669 = vmatprep.subr.mxu0 %v357_v15 }
  0x21   : > { %1670 = vmatpush3.msra.mxu0 %v357_v15 }
  0x22   : > { %1671 = vmatprep.subr.mxu0 %v356_v16 }
  0x23   : > { %1672 = vmatpush3.msra.mxu0 %v356_v16 }
  0x24   : > { %1673 = vmatprep.subr.mxu0 %v355_v17 }
  0x25   : > { %1674 = vmatpush3.msra.mxu0 %v355_v17 }
  0x26   : > { %1675 = vmatprep.subr.mxu0 %v354_v18 }
  0x27   : > { %1676 = vmatpush3.msra.mxu0 %v354_v18 }
  0x28   : > { %1677 = vmatprep.subr.mxu0 %v353_v19 }
  0x29   : > { %1678 = vmatpush3.msra.mxu0 %v353_v19 }
  0x2a   : > { %1679 = vmatprep.subr.mxu0 %v352_v20 }
  0x2b   : > { %1680 = vmatpush3.msra.mxu0 %v352_v20 }
  0x2c   : > { %1682 = vmatmul.mubr.f32.vlgmr.msra.gmra.mxu0 %v337_v21 }
  0x2d   : > { %1684 = vmatprep.mubr.f32.mxu0 %v338_v22 }
  0x30   : > { %1685 = vmatmul.mubr.f32.gmra.mxu0 %v339_v23 }
  0x31   : > { %1687 = vmatprep.mubr.f32.mxu0 %v340_v24 }
  0x34   : > { %1688 = vmatmul.mubr.f32.gmra.mxu0 %v341_v25  ;;  %v860_v25 = vld [vmem:[%s2326_s5 + $0x18] sm:$0xff] }
  0x35   : > { %1690 = vmatprep.mubr.f32.mxu0 %v342_v26  ;;  %1745 = vmatprep.subr.mxu1 %v860_v25  ;;  %v859_v26 = vld [vmem:[%s2326_s5 + $0x10] sm:$0xff] }
  0x38   : > { %1691 = vmatmul.mubr.f32.gmra.mxu0 %v343_v27  ;;  %v858_v27 = vld [vmem:[%s2326_s5 + $0x8] sm:$0xff] }
  0x39   : > { %1693 = vmatprep.mubr.f32.mxu0 %v344_v28  ;;  %v857_v28 = vld [vmem:[%s2326_s5] sm:$0xff] }
  0x3c   : > { %1694 = vmatmul.mubr.f32.gmra.mxu0 %v345_v29  ;;  %v2167_v29 = vld [vmem:[%s2328_s7 + $0x38] sm:$0xff] }
  0x3d   : > { %1696 = vmatprep.mubr.f32.mxu0 %v346_v30  ;;  %v2172_v30 = vld [vmem:[%s2328_s7 + $0x30] sm:$0xff]  ;;  %1777 = vmatprep.subr.mxu0 %v2167_v29 }
  0x3e   : > { %1778 = vmatpush3.msra.mxu0 %v2167_v29 }
  0x3f   : > { %1779 = vmatprep.subr.mxu0 %v2172_v30 }
  0x40   : > { %1697 = vmatmul.mubr.f32.gmra.mxu0 %v347_v31  ;;  %v2180_v31 = vld [vmem:[%s2328_s7 + $0x28] sm:$0xff] }
  0x41   : > { %1699 = vmatprep.mubr.f32.mxu0 %v348_v32  ;;  %1780 = vmatpush3.msra.mxu0 %v2172_v30  ;;  %v2187_v32 = vld [vmem:[%s2328_s7 + $0x20] sm:$0xff] }
  0x42   : > { %1781 = vmatprep.subr.mxu0 %v2180_v31 }
  0x43   : > { %1782 = vmatpush3.msra.mxu0 %v2180_v31 }
  0x44   : > { %1700 = vmatmul.mubr.f32.gmra.mxu0 %v349_v33  ;;  %v2194_v33 = vld [vmem:[%s2328_s7 + $0x18] sm:$0xff]  ;;  %1783 = vmatprep.subr.mxu0 %v2187_v32 }
  0x45   : > { %1702 = vmatprep.mubr.f32.mxu0 %v350_v34  ;;  %1784 = vmatpush3.msra.mxu0 %v2187_v32  ;;  %v2203_v34 = vld [vmem:[%s2325_s4] ss:$0 sm:$0xff] }
  0x46   : > { %1785 = vmatprep.subr.mxu0 %v2194_v33 }
  0x47   : > { %1786 = vmatpush3.msra.mxu0 %v2194_v33 }
  0x48   : > { %1703 = vmatmul.mubr.f32.gmra.mxu0 %v351_v35 }
  0xec   : > { %v1683_v41 = vpop.f32.mrf.mxu0 }
  0xed   : > { %v447_v42 = vadd.f32 %v1683_v41, %v1463_v40 }
  0xee   : > { %v441_v43 = vpop.f32.mrf.mxu0 }
  0xef   : > { %v442_v44 = vadd.f32 %v1463_v40, %v441_v43  ;;  %v521_v47 = vmax.f32 %v447_v42, 0.0 }
  0xf0   : > { %v1686_v45 = vpop.f32.mrf.mxu0 }
  0xf1   : > { %v520_v46 = vmax.f32 %v442_v44, 0.0  ;;  %v457_v48 = vadd.f32 %v1686_v45, %v1463_v40 }
  0xf2   : > { %v451_v49 = vpop.f32.mrf.mxu0 }
  0xf3   : > { %v452_v50 = vadd.f32 %v1463_v40, %v451_v49  ;;  %1721 = vmatprep.mubr.msk.f32.mxu1 %vm551_vm0, %v520_v46  ;;  %v523_v53 = vmax.f32 %v457_v48, 0.0 }
  0xf4   : > { %v1689_v51 = vpop.f32.mrf.mxu0  ;;  %1722 = vmatmul.mubr.msk.f32.vlgmr.msra.gmra.mxu1 %vm551_vm0, %v521_v47 }
  0xf5   : > { %v522_v52 = vmax.f32 %v452_v50, 0.0  ;;  %v467_v54 = vadd.f32 %v1689_v51, %v1463_v40  ;;  %1746 = vmatpush3.msra.mxu1 %v860_v25 }
  0xf6   : > { %v461_v55 = vpop.f32.mrf.mxu0  ;;  %1747 = vmatprep.subr.mxu1 %v859_v26 }
  0xf7   : > { %v462_v56 = vadd.f32 %v1463_v40, %v461_v55  ;;  %1724 = vmatprep.mubr.msk.f32.mxu1 %vm551_vm0, %v522_v52  ;;  %v525_v59 = vmax.f32 %v467_v54, 0.0  ;;  %1748 = vmatpush3.msra.mxu1 %v859_v26 }
  0xf8   : > { %v1692_v57 = vpop.f32.mrf.mxu0  ;;  %1725 = vmatmul.mubr.msk.f32.gmra.mxu1 %vm551_vm0, %v523_v53  ;;  %1749 = vmatprep.subr.mxu1 %v858_v27 }
  0xf9   : > { %v524_v58 = vmax.f32 %v462_v56, 0.0  ;;  %v477_v60 = vadd.f32 %v1692_v57, %v1463_v40  ;;  %1750 = vmatpush3.msra.mxu1 %v858_v27 }
  0xfa   : > { %v471_v61 = vpop.f32.mrf.mxu0  ;;  %1751 = vmatprep.subr.mxu1 %v857_v28 }
  0xfb   : > { %v472_v62 = vadd.f32 %v1463_v40, %v471_v61  ;;  %1727 = vmatprep.mubr.msk.f32.mxu1 %vm551_vm0, %v524_v58  ;;  %v527_v1 = vmax.f32 %v477_v60, 0.0  ;;  %1752 = vmatpush3.msra.mxu1 %v857_v28 }
  0xfc   : > { %v1695_v63 = vpop.f32.mrf.mxu0  ;;  %1728 = vmatmul.mubr.msk.f32.gmra.mxu1 %vm551_vm0, %v525_v59  ;;  %1817 = vmatprep.subr.mxu1 %v2167_v29 }
  0xfd   : > { %v526_v0 = vmax.f32 %v472_v62, 0.0  ;;  %v487_v2 = vadd.f32 %v1695_v63, %v1463_v40 }
  0xfe   : > { %v481_v3 = vpop.f32.mrf.mxu0 }
  0xff   : > { %v482_v4 = vadd.f32 %v1463_v40, %v481_v3  ;;  %1730 = vmatprep.mubr.msk.f32.mxu1 %vm551_vm0, %v526_v0  ;;  %v529_v7 = vmax.f32 %v487_v2, 0.0 }
 0x100   : > { %v1698_v5 = vpop.f32.mrf.mxu0  ;;  %1731 = vmatmul.mubr.msk.f32.gmra.mxu1 %vm551_vm0, %v527_v1 }
 0x101   : > { %v528_v6 = vmax.f32 %v482_v4, 0.0  ;;  %v497_v8 = vadd.f32 %v1698_v5, %v1463_v40 }
 0x102   : > { %v491_v9 = vpop.f32.mrf.mxu0 }
 0x103   : > { %v492_v10 = vadd.f32 %v1463_v40, %v491_v9  ;;  %1733 = vmatprep.mubr.msk.f32.mxu1 %vm551_vm0, %v528_v6  ;;  %v531_v13 = vmax.f32 %v497_v8, 0.0 }
 0x104   : > { %v1701_v11 = vpop.f32.mrf.mxu0  ;;  %1734 = vmatmul.mubr.msk.f32.gmra.mxu1 %vm551_vm0, %v529_v7 }
 0x105   : > { %v530_v12 = vmax.f32 %v492_v10, 0.0  ;;  %v507_v14 = vadd.f32 %v1701_v11, %v1463_v40 }
 0x106   : > { %v501_v15 = vpop.f32.mrf.mxu0 }
 0x107   : > { %v502_v16 = vadd.f32 %v1463_v40, %v501_v15  ;;  %1736 = vmatprep.mubr.msk.f32.mxu1 %vm551_vm0, %v530_v12  ;;  %v533_v19 = vmax.f32 %v507_v14, 0.0 }
 0x108   : > { %v1704_v17 = vpop.f32.mrf.mxu0  ;;  %1737 = vmatmul.mubr.msk.f32.gmra.mxu1 %vm551_vm0, %v531_v13 }
 0x109   : > { %v532_v18 = vmax.f32 %v502_v16, 0.0  ;;  %v517_v20 = vadd.f32 %v1704_v17, %v1463_v40 }
 0x10a   : > { %v511_v21 = vpop.f32.mrf.mxu0 }
 0x10b   : > { %v512_v22 = vadd.f32 %v1463_v40, %v511_v21  ;;  %1739 = vmatprep.mubr.msk.f32.mxu1 %vm551_vm0, %v532_v18  ;;  %v535_v24 = vmax.f32 %v517_v20, 0.0 }
 0x10c   : > { %1740 = vmatmul.mubr.msk.f32.gmra.mxu1 %vm551_vm0, %v533_v19 }
 0x10d   : > { %v534_v23 = vmax.f32 %v512_v22, 0.0 }
 0x10f   : > { %1742 = vmatprep.mubr.msk.f32.mxu1 %vm551_vm0, %v534_v23 }
 0x110   : > { %1743 = vmatmul.mubr.msk.f32.gmra.mxu1 %vm551_vm0, %v535_v24 }
 0x1b4   : > { %v1723_v35 = vpop.f32.mrf.mxu1 }
 0x1b5   : > { %v672_v36 = vadd.f32 %v1723_v35, %v2203_v34 }
 0x1b6   : > { %v666_v37 = vpop.f32.mrf.mxu1 }
 0x1b7   : > { %v746_v38 = vmax.f32 %v672_v36, 0.0  ;;  %v667_v39 = vadd.f32 %v2203_v34, %v666_v37 }
 0x1b8   : > { %v1726_v40 = vpop.f32.mrf.mxu1 }
 0x1b9   : > { %v1482_v41 = vmul.f32 -1.442695, %v746_v38  ;;  %v745_v42 = vmax.f32 %v667_v39, 0.0  ;;  %v682_v43 = vadd.f32 %v1726_v40, %v2203_v34 }
 0x1ba   : > { %v676_v44 = vpop.f32.mrf.mxu1 }
 0x1bb   : > { %1841 = vpow2.f32 %v1482_v41  ;;  %v1481_v45 = vmul.f32 -1.442695, %v745_v42  ;;  %v748_v46 = vmax.f32 %v682_v43, 0.0  ;;  %v677_v47 = vadd.f32 %v2203_v34, %v676_v44 }
 0x1bc   : > { %v1729_v48 = vpop.f32.mrf.mxu1 }
 0x1bd   : > { %1843 = vpow2.f32 %v1481_v45  ;;  %v1484_v49 = vmul.f32 -1.442695, %v748_v46  ;;  %v747_v50 = vmax.f32 %v677_v47, 0.0  ;;  %v692_v51 = vadd.f32 %v1729_v48, %v2203_v34 }
 0x1be   : > { %v686_v52 = vpop.f32.mrf.mxu1 }
 0x1bf   : > { %1845 = vpow2.f32 %v1484_v49  ;;  %v1483_v53 = vmul.f32 -1.442695, %v747_v50  ;;  %v750_v54 = vmax.f32 %v692_v51, 0.0  ;;  %v687_v55 = vadd.f32 %v2203_v34, %v686_v52 }
 0x1c0   : > { %v1732_v56 = vpop.f32.mrf.mxu1 }
 0x1c1   : > { %1847 = vpow2.f32 %v1483_v53  ;;  %v1486_v57 = vmul.f32 -1.442695, %v750_v54  ;;  %v749_v58 = vmax.f32 %v687_v55, 0.0  ;;  %v702_v59 = vadd.f32 %v1732_v56, %v2203_v34 }
 0x1c2   : > { %v696_v60 = vpop.f32.mrf.mxu1 }
 0x1c3   : > { %1849 = vpow2.f32 %v1486_v57  ;;  %v1485_v61 = vmul.f32 -1.442695, %v749_v58  ;;  %v752_v62 = vmax.f32 %v702_v59, 0.0  ;;  %v697_v63 = vadd.f32 %v2203_v34, %v696_v60 }
 0x1c4   : > { %v1735_v0 = vpop.f32.mrf.mxu1 }
 0x1c5   : > { %1851 = vpow2.f32 %v1485_v61  ;;  %v1488_v1 = vmul.f32 -1.442695, %v752_v62  ;;  %v751_v2 = vmax.f32 %v697_v63, 0.0  ;;  %v712_v3 = vadd.f32 %v1735_v0, %v2203_v34 }
 0x1c6   : > { %v706_v4 = vpop.f32.mrf.mxu1 }
 0x1c7   : > { %1853 = vpow2.f32 %v1488_v1  ;;  %v1487_v5 = vmul.f32 -1.442695, %v751_v2  ;;  %v754_v6 = vmax.f32 %v712_v3, 0.0  ;;  %v707_v7 = vadd.f32 %v2203_v34, %v706_v4 }
 0x1c8   : > { %v1842_v8 = vpop.eup %1841  ;;  %v1738_v9 = vpop.f32.mrf.mxu1 }
 0x1c9   : > { %v810_v10 = vadd.f32 1.0, %v1842_v8  ;;  %1855 = vpow2.f32 %v1487_v5  ;;  %v1490_v11 = vmul.f32 -1.442695, %v754_v6  ;;  %v753_v12 = vmax.f32 %v707_v7, 0.0 }
 0x1ca   : > { %v1844_v13 = vpop.eup %1843  ;;  %v722_v14 = vadd.f32 %v1738_v9, %v2203_v34  ;;  %v716_v15 = vpop.f32.mrf.mxu1 }
 0x1cb   : > { %1857 = vrcp.f32 %v810_v10  ;;  %v809_v16 = vadd.f32 1.0, %v1844_v13  ;;  %v1489_v17 = vmul.f32 -1.442695, %v753_v12  ;;  %v717_v18 = vadd.f32 %v2203_v34, %v716_v15 }
 0x1cc   : > { %v1846_v19 = vpop.eup %1845  ;;  %1859 = vpow2.f32 %v1490_v11  ;;  %v756_v20 = vmax.f32 %v722_v14, 0.0  ;;  %v1741_v21 = vpop.f32.mrf.mxu1 }
 0x1cd   : > { %1861 = vrcp.f32 %v809_v16  ;;  %v812_v22 = vadd.f32 1.0, %v1846_v19  ;;  %v755_v23 = vmax.f32 %v717_v18, 0.0  ;;  %v732_v24 = vadd.f32 %v1741_v21, %v2203_v34  ;;  %v1080_v19 = vld [vmem:[%s2328_s7 + $0x10] sm:$0xff]  ;;  %v1078_v21 = vld [vmem:[%s2328_s7] sm:$0xff] }
 0x1ce   : > { %v1848_v25 = vpop.eup %1847  ;;  %1863 = vpow2.f32 %v1489_v17  ;;  %v1492_v26 = vmul.f32 -1.442695, %v756_v20  ;;  %v726_v27 = vpop.f32.mrf.mxu1  ;;  %1787 = vmatprep.subr.mxu0 %v1080_v19  ;;  %v1079_v20 = vld [vmem:[%s2328_s7 + $0x8] sm:$0xff] }
 0x1cf   : > { %1865 = vrcp.f32 %v812_v22  ;;  %v811_v28 = vadd.f32 1.0, %v1848_v25  ;;  %v1491_v35 = vmul.f32 -1.442695, %v755_v23  ;;  %v758_v36 = vmax.f32 %v732_v24, 0.0  ;;  %1788 = vmatpush3.msra.mxu0 %v1080_v19  ;;  %v1497_v22 = vld [vmem:[%s2327_s6] ss:$0 sm:$0xff] }
 0x1d0   : > { %v1850_v37 = vpop.eup %1849  ;;  %1867 = vpow2.f32 %v1492_v26  ;;  %v727_v38 = vadd.f32 %v2203_v34, %v726_v27  ;;  %v1744_v39 = vpop.f32.mrf.mxu1  ;;  %1789 = vmatprep.subr.mxu0 %v1079_v20 }
 0x1d1   : > { %1869 = vrcp.f32 %v811_v28  ;;  %v814_v40 = vadd.f32 1.0, %v1850_v37  ;;  %v1494_v41 = vmul.f32 -1.442695, %v758_v36  ;;  %v742_v42 = vadd.f32 %v1744_v39, %v2203_v34  ;;  %1790 = vmatpush3.msra.mxu0 %v1079_v20 }
 0x1d2   : > { %v1852_v43 = vpop.eup %1851  ;;  %1871 = vpow2.f32 %v1491_v35  ;;  %v757_v44 = vmax.f32 %v727_v38, 0.0  ;;  %v736_v45 = vpop.f32.mrf.mxu1  ;;  %1791 = vmatprep.subr.mxu0 %v1078_v21 }
 0x1d3   : > { %1873 = vrcp.f32 %v814_v40  ;;  %v813_v46 = vadd.f32 1.0, %v1852_v43  ;;  %v760_v47 = vmax.f32 %v742_v42, 0.0  ;;  %v737_v48 = vadd.f32 %v2203_v34, %v736_v45  ;;  %1792 = vmatpush3.msra.mxu0 %v1078_v21 }
 0x1d4   : > { %v1854_v49 = vpop.eup %1853  ;;  %1875 = vpow2.f32 %v1494_v41  ;;  %v1493_v50 = vmul.f32 -1.442695, %v757_v44 }
 0x1d5   : > { %1877 = vrcp.f32 %v813_v46  ;;  %v816_v51 = vadd.f32 1.0, %v1854_v49  ;;  %v1496_v52 = vmul.f32 -1.442695, %v760_v47  ;;  %v759_v53 = vmax.f32 %v737_v48, 0.0 }
 0x1d6   : > { %v1856_v54 = vpop.eup %1855  ;;  %1879 = vpow2.f32 %v1493_v50 }
 0x1d7   : > { %1881 = vrcp.f32 %v816_v51  ;;  %v815_v55 = vadd.f32 1.0, %v1856_v54  ;;  %v1495_v56 = vmul.f32 -1.442695, %v759_v53 }
 0x1d8   : > { %v1858_v57 = vpop.eup %1857  ;;  %1883 = vpow2.f32 %v1496_v52 }
 0x1d9   : > { %v1860_v58 = vpop.eup %1859  ;;  %1885 = vrcp.f32 %v815_v55 }
 0x1da   : > { %v1862_v59 = vpop.eup %1861  ;;  %1887 = vpow2.f32 %v1495_v56  ;;  %v818_v60 = vadd.f32 1.0, %v1860_v58 }
 0x1db   : > { %v1864_v34 = vpop.eup %1863  ;;  %1753 = vmatprep.mubr.msk.f32.mxu1 %vm868_vm1, %v1862_v59 }
 0x1dc   : > { %v1866_v61 = vpop.eup %1865  ;;  %v817_v62 = vadd.f32 1.0, %v1864_v34  ;;  %1754 = vmatmul.mubr.msk.f32.vlgmr.msra.gmra.mxu1 %vm868_vm1, %v1858_v57 }
 0x1dd   : > { %v1868_v63 = vpop.eup %1867  ;;  %1825 = vmatpush3.msra.mxu1 %v2167_v29 }
 0x1de   : > { %v1870_v0 = vpop.eup %1869  ;;  %1889 = vrcp.f32 %v817_v62  ;;  %1818 = vmatprep.subr.mxu1 %v2172_v30  ;;  %v820_v2 = vadd.f32 1.0, %v1868_v63 }
 0x1df   : > { %v1872_v1 = vpop.eup %1871  ;;  %1891 = vrcp.f32 %v818_v60  ;;  %1756 = vmatprep.mubr.msk.f32.mxu1 %vm868_vm1, %v1870_v0  ;;  %1826 = vmatpush3.msra.mxu1 %v2172_v30 }
 0x1e0   : > { %v1874_v3 = vpop.eup %1873  ;;  %v819_v4 = vadd.f32 1.0, %v1872_v1  ;;  %1757 = vmatmul.mubr.msk.f32.gmra.mxu1 %vm868_vm1, %v1866_v61  ;;  %1819 = vmatprep.subr.mxu1 %v2180_v31 }
 0x1e1   : > { %v1876_v5 = vpop.eup %1875  ;;  %1827 = vmatpush3.msra.mxu1 %v2180_v31 }
 0x1e2   : > { %v1878_v29 = vpop.eup %1877  ;;  %1893 = vrcp.f32 %v819_v4  ;;  %1820 = vmatprep.subr.mxu1 %v2187_v32  ;;  %v822_v7 = vadd.f32 1.0, %v1876_v5 }
 0x1e3   : > { %v1880_v6 = vpop.eup %1879  ;;  %1895 = vrcp.f32 %v820_v2  ;;  %1759 = vmatprep.mubr.msk.f32.mxu1 %vm868_vm1, %v1878_v29  ;;  %1828 = vmatpush3.msra.mxu1 %v2187_v32 }
 0x1e4   : > { %v1882_v30 = vpop.eup %1881  ;;  %v821_v8 = vadd.f32 1.0, %v1880_v6  ;;  %1760 = vmatmul.mubr.msk.f32.gmra.mxu1 %vm868_vm1, %v1874_v3  ;;  %1821 = vmatprep.subr.mxu1 %v2194_v33 }
 0x1e5   : > { %v1884_v9 = vpop.eup %1883  ;;  %1829 = vmatpush3.msra.mxu1 %v2194_v33 }
 0x1e6   : > { %v1886_v31 = vpop.eup %1885  ;;  %1897 = vrcp.f32 %v821_v8  ;;  %v824_v11 = vadd.f32 1.0, %v1884_v9  ;;  %1822 = vmatprep.subr.mxu1 %v1080_v19 }
 0x1e7   : > { %v1888_v10 = vpop.eup %1887  ;;  %1899 = vrcp.f32 %v822_v7  ;;  %1762 = vmatprep.mubr.msk.f32.mxu1 %vm868_vm1, %v1886_v31  ;;  %1830 = vmatpush3.msra.mxu1 %v1080_v19  ;;  %v2277_v31 = vld [vmem:[%s2329_s8] ss:$0 sm:$0xff] }
 0x1e8   : > { %v823_v12 = vadd.f32 1.0, %v1888_v10  ;;  %1763 = vmatmul.mubr.msk.f32.gmra.mxu1 %vm868_vm1, %v1882_v30  ;;  %1823 = vmatprep.subr.mxu1 %v1079_v20 }
 0x1e9   : > { %1831 = vmatpush3.msra.mxu1 %v1079_v20 }
 0x1ea   : > { %1901 = vrcp.f32 %v823_v12  ;;  %1824 = vmatprep.subr.mxu1 %v1078_v21 }
 0x1eb   : > { %v1890_v32 = vpop.eup %1889  ;;  %1903 = vrcp.f32 %v824_v11  ;;  %1832 = vmatpush3.msra.mxu1 %v1078_v21 }
 0x1ec   : > { %v1892_v13 = vpop.eup %1891  ;;  %1765 = vmatprep.mubr.msk.f32.mxu1 %vm868_vm1, %v1890_v32 }
 0x1ed   : > { %1766 = vmatmul.mubr.msk.f32.gmra.mxu1 %vm868_vm1, %v1892_v13 }
 0x1ef   : > { %v1894_v14 = vpop.eup %1893 }
 0x1f0   : > { %v1896_v33 = vpop.eup %1895  ;;  %1768 = vmatprep.mubr.msk.f32.mxu1 %vm868_vm1, %v1894_v14 }
 0x1f1   : > { %1769 = vmatmul.mubr.msk.f32.gmra.mxu1 %vm868_vm1, %v1896_v33 }
 0x1f3   : > { %v1898_v15 = vpop.eup %1897 }
 0x1f4   : > { %v1900_v16 = vpop.eup %1899  ;;  %1771 = vmatprep.mubr.msk.f32.mxu1 %vm868_vm1, %v1898_v15 }
 0x1f5   : > { %1772 = vmatmul.mubr.msk.f32.gmra.mxu1 %vm868_vm1, %v1900_v16 }
 0x1f7   : > { %v1902_v17 = vpop.eup %1901 }
 0x1f8   : > { %v1904_v18 = vpop.eup %1903  ;;  %1774 = vmatprep.mubr.msk.f32.mxu1 %vm868_vm1, %v1902_v17 }
 0x1f9   : > { %1775 = vmatmul.mubr.msk.f32.gmra.mxu1 %vm868_vm1, %v1904_v18 }
 0x29c   : > { %v1755_v23 = vpop.f32.mrf.mxu1 }
 0x29d   : > { %v989_v24 = vadd.f32 %v1755_v23, %v1497_v22 }
 0x29e   : > { %v983_v25 = vpop.f32.mrf.mxu1 }
 0x29f   : > { %v984_v26 = vadd.f32 %v1497_v22, %v983_v25  ;;  %v1063_v35 = vmax.f32 %v989_v24, 0.0 }
 0x2a0   : > { %v1758_v27 = vpop.f32.mrf.mxu1 }
 0x2a1   : > { %v1062_v28 = vmax.f32 %v984_v26, 0.0  ;;  %v999_v36 = vadd.f32 %v1758_v27, %v1497_v22 }
 0x2a2   : > { %v993_v37 = vpop.f32.mrf.mxu1 }
 0x2a3   : > { %v994_v38 = vadd.f32 %v1497_v22, %v993_v37  ;;  %1793 = vmatprep.mubr.msk.f32.mxu0 %vm551_vm0, %v1062_v28  ;;  %v1065_v41 = vmax.f32 %v999_v36, 0.0 }
 0x2a4   : > { %v1761_v39 = vpop.f32.mrf.mxu1  ;;  %1794 = vmatmul.mubr.msk.f32.vlgmr.msra.gmra.mxu0 %vm551_vm0, %v1063_v35 }
 0x2a5   : > { %v1064_v40 = vmax.f32 %v994_v38, 0.0  ;;  %v1009_v42 = vadd.f32 %v1761_v39, %v1497_v22 }
 0x2a6   : > { %v1003_v43 = vpop.f32.mrf.mxu1 }
 0x2a7   : > { %v1004_v44 = vadd.f32 %v1497_v22, %v1003_v43  ;;  %1796 = vmatprep.mubr.msk.f32.mxu0 %vm551_vm0, %v1064_v40  ;;  %v1067_v47 = vmax.f32 %v1009_v42, 0.0 }
 0x2a8   : > { %v1764_v45 = vpop.f32.mrf.mxu1  ;;  %1797 = vmatmul.mubr.msk.f32.gmra.mxu0 %vm551_vm0, %v1065_v41 }
 0x2a9   : > { %v1066_v46 = vmax.f32 %v1004_v44, 0.0  ;;  %v1019_v48 = vadd.f32 %v1764_v45, %v1497_v22 }
 0x2aa   : > { %v1013_v49 = vpop.f32.mrf.mxu1 }
 0x2ab   : > { %v1014_v50 = vadd.f32 %v1497_v22, %v1013_v49  ;;  %1799 = vmatprep.mubr.msk.f32.mxu0 %vm551_vm0, %v1066_v46  ;;  %v1069_v53 = vmax.f32 %v1019_v48, 0.0 }
 0x2ac   : > { %1800 = vmatmul.mubr.msk.f32.gmra.mxu0 %vm551_vm0, %v1067_v47 }
 0x2ad   : > { %v1068_v51 = vmax.f32 %v1014_v50, 0.0  ;;  %v1767_v52 = vpop.f32.mrf.mxu1 }
 0x2ae   : > { %v1029_v54 = vadd.f32 %v1767_v52, %v1497_v22 }
 0x2af   : > { %v1023_v55 = vpop.f32.mrf.mxu1  ;;  %1802 = vmatprep.mubr.msk.f32.mxu0 %vm551_vm0, %v1068_v51 }
 0x2b0   : > { %v1024_v56 = vadd.f32 %v1497_v22, %v1023_v55  ;;  %1803 = vmatmul.mubr.msk.f32.gmra.mxu0 %vm551_vm0, %v1069_v53  ;;  %v1071_v59 = vmax.f32 %v1029_v54, 0.0 }
 0x2b1   : > { %v1770_v57 = vpop.f32.mrf.mxu1 }
 0x2b2   : > { %v1070_v58 = vmax.f32 %v1024_v56, 0.0  ;;  %v1039_v34 = vadd.f32 %v1770_v57, %v1497_v22 }
 0x2b3   : > { %v1033_v60 = vpop.f32.mrf.mxu1 }
 0x2b4   : > { %v1034_v61 = vadd.f32 %v1497_v22, %v1033_v60  ;;  %1805 = vmatprep.mubr.msk.f32.mxu0 %vm551_vm0, %v1070_v58  ;;  %v1073_v0 = vmax.f32 %v1039_v34, 0.0 }
 0x2b5   : > { %v1773_v62 = vpop.f32.mrf.mxu1  ;;  %1806 = vmatmul.mubr.msk.f32.gmra.mxu0 %vm551_vm0, %v1071_v59 }
 0x2b6   : > { %v1072_v63 = vmax.f32 %v1034_v61, 0.0  ;;  %v1049_v1 = vadd.f32 %v1773_v62, %v1497_v22 }
 0x2b7   : > { %v1043_v2 = vpop.f32.mrf.mxu1 }
 0x2b8   : > { %v1044_v3 = vadd.f32 %v1497_v22, %v1043_v2  ;;  %1808 = vmatprep.mubr.msk.f32.mxu0 %vm551_vm0, %v1072_v63  ;;  %v1075_v29 = vmax.f32 %v1049_v1, 0.0 }
 0x2b9   : > { %v1776_v4 = vpop.f32.mrf.mxu1  ;;  %1809 = vmatmul.mubr.msk.f32.gmra.mxu0 %vm551_vm0, %v1073_v0 }
 0x2ba   : > { %v1074_v5 = vmax.f32 %v1044_v3, 0.0  ;;  %v1059_v6 = vadd.f32 %v1776_v4, %v1497_v22 }
 0x2bb   : > { %v1053_v7 = vpop.f32.mrf.mxu1 }
 0x2bc   : > { %v1054_v30 = vadd.f32 %v1497_v22, %v1053_v7  ;;  %1811 = vmatprep.mubr.msk.f32.mxu1 %vm551_vm0, %v1074_v5  ;;  %v1077_v9 = vmax.f32 %v1059_v6, 0.0 }
 0x2bd   : > { %1812 = vmatmul.mubr.msk.f32.vlgmr.msra.gmra.mxu1 %vm551_vm0, %v1075_v29 }
 0x2be   : > { %v1076_v8 = vmax.f32 %v1054_v30, 0.0 }
 0x2c0   : > { %1814 = vmatprep.mubr.msk.f32.mxu1 %vm551_vm0, %v1076_v8 }
 0x2c1   : > { %1815 = vmatmul.mubr.msk.f32.gmra.mxu1 %vm551_vm0, %v1077_v9 }
 0x364   : > { %v1795_v10 = vpop.f32.mrf.mxu0 }
 0x365   : > { %v1213_v11 = vadd.f32 %v1795_v10, %v2277_v31 }
 0x366   : > { %v1207_v12 = vpop.f32.mrf.mxu0 }
 0x367   : > { %v1532_v32 = vmul.f32 -1.442695, %v1213_v11  ;;  %v1208_v13 = vadd.f32 %v2277_v31, %v1207_v12 }
 0x368   : > { %v1798_v14 = vpop.f32.mrf.mxu0 }
 0x369   : > { %1905 = vpow2.f32 %v1532_v32  ;;  %v1531_v33 = vmul.f32 -1.442695, %v1208_v13  ;;  %v1223_v15 = vadd.f32 %v1798_v14, %v2277_v31 }
 0x36a   : > { %v1217_v16 = vpop.f32.mrf.mxu0 }
 0x36b   : > { %1907 = vpow2.f32 %v1531_v33  ;;  %v1534_v17 = vmul.f32 -1.442695, %v1223_v15  ;;  %v1218_v18 = vadd.f32 %v2277_v31, %v1217_v16 }
 0x36c   : > { %v1801_v19 = vpop.f32.mrf.mxu0 }
 0x36d   : > { %1909 = vpow2.f32 %v1534_v17  ;;  %v1533_v20 = vmul.f32 -1.442695, %v1218_v18  ;;  %v1233_v21 = vadd.f32 %v1801_v19, %v2277_v31 }
 0x36e   : > { %v1227_v22 = vpop.f32.mrf.mxu0 }
 0x36f   : > { %1911 = vpow2.f32 %v1533_v20  ;;  %v1536_v23 = vmul.f32 -1.442695, %v1233_v21  ;;  %v1228_v24 = vadd.f32 %v2277_v31, %v1227_v22 }
 0x370   : > { %v1804_v25 = vpop.f32.mrf.mxu0 }
 0x371   : > { %1913 = vpow2.f32 %v1536_v23  ;;  %v1535_v26 = vmul.f32 -1.442695, %v1228_v24  ;;  %v1243_v27 = vadd.f32 %v1804_v25, %v2277_v31 }
 0x372   : > { %v1237_v28 = vpop.f32.mrf.mxu0 }
 0x373   : > { %1915 = vpow2.f32 %v1535_v26  ;;  %v1538_v35 = vmul.f32 -1.442695, %v1243_v27  ;;  %v1238_v36 = vadd.f32 %v2277_v31, %v1237_v28 }
 0x375   : > { %1917 = vpow2.f32 %v1538_v35  ;;  %v1537_v37 = vmul.f32 -1.442695, %v1238_v36  ;;  %v1807_v38 = vpop.f32.mrf.mxu0 }
 0x376   : > { %v1906_v39 = vpop.eup %1905  ;;  %v1253_v40 = vadd.f32 %v1807_v38, %v2277_v31 }
 0x377   : > { %v1335_v41 = vadd.f32 1.0, %v1906_v39  ;;  %1919 = vpow2.f32 %v1537_v37  ;;  %v1247_v42 = vpop.f32.mrf.mxu0 }
 0x378   : > { %v1908_v43 = vpop.eup %1907  ;;  %v1540_v44 = vmul.f32 -1.442695, %v1253_v40  ;;  %v1248_v45 = vadd.f32 %v2277_v31, %v1247_v42 }
 0x379   : > { %1921 = vrcp.f32 %v1335_v41  ;;  %v1334_v46 = vadd.f32 1.0, %v1908_v43  ;;  %v1810_v47 = vpop.f32.mrf.mxu0 }
 0x37a   : > { %v1910_v48 = vpop.eup %1909  ;;  %1923 = vpow2.f32 %v1540_v44  ;;  %v1539_v49 = vmul.f32 -1.442695, %v1248_v45  ;;  %v1263_v50 = vadd.f32 %v1810_v47, %v2277_v31 }
 0x37b   : > { %1925 = vrcp.f32 %v1334_v46  ;;  %v1337_v51 = vadd.f32 1.0, %v1910_v48  ;;  %v1257_v52 = vpop.f32.mrf.mxu0 }
 0x37c   : > { %v1912_v53 = vpop.eup %1911  ;;  %1927 = vpow2.f32 %v1539_v49  ;;  %v1542_v54 = vmul.f32 -1.442695, %v1263_v50  ;;  %v1258_v55 = vadd.f32 %v2277_v31, %v1257_v52 }
 0x37d   : > { %1929 = vrcp.f32 %v1337_v51  ;;  %v1336_v56 = vadd.f32 1.0, %v1912_v53  ;;  %v1813_v57 = vpop.f32.mrf.mxu1 }
 0x37e   : > { %v1914_v58 = vpop.eup %1913  ;;  %1931 = vpow2.f32 %v1542_v54  ;;  %v1541_v59 = vmul.f32 -1.442695, %v1258_v55  ;;  %v1273_v34 = vadd.f32 %v1813_v57, %v2277_v31 }
 0x37f   : > { %1933 = vrcp.f32 %v1336_v56  ;;  %v1339_v60 = vadd.f32 1.0, %v1914_v58  ;;  %v1267_v61 = vpop.f32.mrf.mxu1 }
 0x380   : > { %v1916_v62 = vpop.eup %1915  ;;  %1935 = vpow2.f32 %v1541_v59  ;;  %v1544_v63 = vmul.f32 -1.442695, %v1273_v34  ;;  %v1268_v0 = vadd.f32 %v2277_v31, %v1267_v61 }
 0x381   : > { %1937 = vrcp.f32 %v1339_v60  ;;  %v1338_v1 = vadd.f32 1.0, %v1916_v62  ;;  %v1816_v2 = vpop.f32.mrf.mxu1 }
 0x382   : > { %v1918_v3 = vpop.eup %1917  ;;  %1939 = vpow2.f32 %v1544_v63  ;;  %v1543_v4 = vmul.f32 -1.442695, %v1268_v0  ;;  %v1283_v5 = vadd.f32 %v1816_v2, %v2277_v31 }
 0x383   : > { %1941 = vrcp.f32 %v1338_v1  ;;  %v1341_v29 = vadd.f32 1.0, %v1918_v3  ;;  %v1277_v6 = vpop.f32.mrf.mxu1 }
 0x384   : > { %v1920_v7 = vpop.eup %1919  ;;  %1943 = vpow2.f32 %v1543_v4  ;;  %v1546_v30 = vmul.f32 -1.442695, %v1283_v5  ;;  %v1278_v8 = vadd.f32 %v2277_v31, %v1277_v6 }
 0x385   : > { %1945 = vrcp.f32 %v1341_v29  ;;  %v1340_v9 = vadd.f32 1.0, %v1920_v7 }
 0x386   : > { %v1922_v10 = vpop.eup %1921  ;;  %1947 = vpow2.f32 %v1546_v30  ;;  %v1545_v11 = vmul.f32 -1.442695, %v1278_v8 }
 0x387   : > { %v1924_v12 = vpop.eup %1923  ;;  %1383 = vst [vmem:[%s2299_s27 + $0x8] sm:$0xff] %v1922_v10  ;;  %1949 = vrcp.f32 %v1340_v9 }
 0x388   : > { %v1926_v32 = vpop.eup %1925  ;;  %v1343_v13 = vadd.f32 1.0, %v1924_v12  ;;  %1951 = vpow2.f32 %v1545_v11 }
 0x389   : > { %v1928_v14 = vpop.eup %1927  ;;  %1382 = vst [vmem:[%s2299_s27] sm:$0xff] %v1926_v32 }
 0x38a   : > { %v1930_v33 = vpop.eup %1929  ;;  %1953 = vrcp.f32 %v1343_v13  ;;  %v1342_v15 = vadd.f32 1.0, %v1928_v14 }
 0x38b   : > { %v1932_v31 = vpop.eup %1931  ;;  %1385 = vst [vmem:[%s2299_s27 + $0x18] sm:$0xff] %v1930_v33 }
 0x38c   : > { %v1934_v16 = vpop.eup %1933  ;;  %1955 = vrcp.f32 %v1342_v15  ;;  %v1345_v17 = vadd.f32 1.0, %v1932_v31 }
 0x38d   : > { %v1936_v18 = vpop.eup %1935  ;;  %1384 = vst [vmem:[%s2299_s27 + $0x10] sm:$0xff] %v1934_v16 }
 0x38e   : > { %v1938_v19 = vpop.eup %1937  ;;  %1957 = vrcp.f32 %v1345_v17  ;;  %v1344_v20 = vadd.f32 1.0, %v1936_v18 }
 0x38f   : > { %v1940_v21 = vpop.eup %1939  ;;  %1387 = vst [vmem:[%s2299_s27 + $0x28] sm:$0xff] %v1938_v19 }
 0x390   : > { %v1942_v22 = vpop.eup %1941  ;;  %1959 = vrcp.f32 %v1344_v20  ;;  %v1347_v23 = vadd.f32 1.0, %v1940_v21 }
 0x391   : > { %v1944_v24 = vpop.eup %1943  ;;  %1386 = vst [vmem:[%s2299_s27 + $0x20] sm:$0xff] %v1942_v22 }
 0x392   : > { %v1946_v25 = vpop.eup %1945  ;;  %1961 = vrcp.f32 %v1347_v23  ;;  %v1346_v26 = vadd.f32 1.0, %v1944_v24 }
 0x393   : > { %v1948_v27 = vpop.eup %1947  ;;  %1389 = vst [vmem:[%s2299_s27 + $0x38] sm:$0xff] %v1946_v25 }
 0x394   : > { %v1950_v28 = vpop.eup %1949  ;;  %1963 = vrcp.f32 %v1346_v26  ;;  %v1349_v35 = vadd.f32 1.0, %v1948_v27 }
 0x395   : > { %v1952_v36 = vpop.eup %1951  ;;  %1388 = vst [vmem:[%s2299_s27 + $0x30] sm:$0xff] %v1950_v28 }
 0x396   : > { %1965 = vrcp.f32 %v1349_v35  ;;  %v1348_v37 = vadd.f32 1.0, %v1952_v36 }
 0x397   : > { %v1954_v38 = vpop.eup %1953 }
 0x398   : > { %1391 = vst [vmem:[%s2299_s27 + $0x48] sm:$0xff] %v1954_v38  ;;  %1967 = vrcp.f32 %v1348_v37 }
 0x399   : > { %v1956_v39 = vpop.eup %1955 }
 0x39a   : > { %1390 = vst [vmem:[%s2299_s27 + $0x40] sm:$0xff] %v1956_v39 }
 0x39b   : > { %v1958_v40 = vpop.eup %1957 }
 0x39c   : > { %1393 = vst [vmem:[%s2299_s27 + $0x58] sm:$0xff] %v1958_v40 }
 0x39d   : > { %v1960_v41 = vpop.eup %1959 }
 0x39e   : > { %1392 = vst [vmem:[%s2299_s27 + $0x50] sm:$0xff] %v1960_v41 }
 0x39f   : > { %v1962_v42 = vpop.eup %1961 }
 0x3a0   : > { %1395 = vst [vmem:[%s2299_s27 + $0x68] sm:$0xff] %v1962_v42 }
 0x3a1   : > { %v1964_v43 = vpop.eup %1963 }
 0x3a2   : > { %1394 = vst [vmem:[%s2299_s27 + $0x60] sm:$0xff] %v1964_v43 }
 0x3a3   : > { %v1966_v44 = vpop.eup %1965 }
 0x3a4   : > { %1397 = vst [vmem:[%s2299_s27 + $0x78] sm:$0xff] %v1966_v44 }
 0x3a5   : > { %v1968_v45 = vpop.eup %1967 }
 0x3a6   : > { %1396 = vst [vmem:[%s2299_s27 + $0x70] sm:$0xff] %v1968_v45 }
 0x3a7 PF: > { %s19_s30 = sadd.s32 1, %s1975_s30  }
 0x3a8   : > { %p16_p4 = scmp.ge.s32.totalorder %s19_s30, 4  }
 0x3aa   :  { %18 = sbr.rel (!%p16_p4) target bundleno = 1 (0x1), region = 86 }

</bundles_post_ra>
